<compile_context>
chip_gen: v7x
topology: tpu7x:2x2x1
jax: 0.10.0
libtpu: 0.0.40
codegen_flags: <defaults>
</compile_context>

<pallas_src>
import functools

import jax
import jax.numpy as jnp
from jax import lax
from jax.experimental import pallas as pl
from jax.experimental.pallas import tpu as pltpu


def _cca_kernel(x_ref, w_ref, b_ref, o_ref, *, C, Bt):
    # Packed parameters: static, aligned slices of the two small refs.
    wqk = w_ref[0:C, :]          # (C, C)  fused q/k projection  Wqk = wq wk^T
    wvt = w_ref[C:2 * C, :]      # (C, C)  v projection          wv^T
    cv = b_ref[:, 0:1]           # (C, 1)  column-bias coeffs    wk @ bq
    bv = b_ref[:, 1:2]           # (C, 1)  v bias

    for t in range(Bt):          # static unroll over the images packed per step
        x = x_ref[t]             # (C, HW) f32, lane-dense

        # Channel projections (K = C, tiny; keep f32 -- MXU cost negligible).
        m = jnp.dot(wqk, x, preferred_element_type=jnp.float32)        # (C, HW)
        v = jnp.dot(wvt, x, preferred_element_type=jnp.float32) + bv   # (C, HW)

        # Logits att[i, j] = x_i^T Wqk x_j + (wk bq).x_j.
        # Row-constant terms x_i.(wq bk) and bq.bk are softmax-invariant and
        # omitted.  bf16 matmul operands, f32 accumulation.
        x_bf = x.astype(jnp.bfloat16)
        att = lax.dot_general(x_bf, m.astype(jnp.bfloat16),
                              (((0,), (0,)), ((), ())),
                              preferred_element_type=jnp.float32)      # (HWi,HWj)
        col = jnp.sum(cv * x, axis=0, keepdims=True)                   # (1, HWj)
        att = att + col

        # Numerically stable softmax over j (lane axis); VPU math stays f32.
        att = att - jnp.max(att, axis=-1, keepdims=True)
        p_bf = jnp.exp(att).astype(jnp.bfloat16)                       # unnormalized

        # Row sums via an MXU matvec so they land lane-dense as (1, HWi):
        # no (HW,1)->(1,HW) transpose and the reduction stays off the XLU.
        ones_row = jnp.ones((1, p_bf.shape[1]), jnp.bfloat16)
        l_row = lax.dot_general(ones_row, p_bf, (((1,), (1,)), ((), ())),
                                preferred_element_type=jnp.float32)    # (1, HWi)
        inv_l = pl.reciprocal(l_row, approx=True)                      # EUP slot

        # Normalize v (C*HW elements) instead of p (HW*HW), then contract i.
        vs = (v * inv_l).astype(jnp.bfloat16)                          # (C, HWi)
        out = jnp.dot(vs, p_bf, preferred_element_type=jnp.float32)    # (C, HWj)
        o_ref[t] = out + x                                             # residual


def criss_cross_attention(x_nchw, wq, bq, wk, bk, wv, bv, *, max_grid_steps=2):
    """x_nchw: (B, C, H, W) f32.  wq/wk: (C, Cb), wv: (C, C) stored as (in, out);
    biases bq/bk: (Cb,), bv: (C,)."""
    B, C, H, W = x_nchw.shape
    HW = H * W

    # NCHW -> (B, C, HW): pure reshape; input and output blocks stay lane-dense.
    x = x_nchw.reshape(B, C, HW)

    # Fused / packed parameters (tiny, computed once at trace time).
    wqk = wq @ wk.T                                     # (C, C)
    wvt = wv.T                                          # (C, C)
    w_packed = jnp.concatenate([wqk, wvt], axis=0)      # (2C, C): one DMA stream
    b_packed = jnp.stack([wk @ bq, bv], axis=1)         # (C, 2):  one DMA stream

    # Grid sizing: >= 2 "parallel" steps keeps both v7x TensorCores busy; beyond
    # that pack as many images per step as possible to amortize the ~0.35 us
    # per-step overhead (v5e/v6e have a single TC, where fewer steps is better).
    num_steps = min(B, max(1, max_grid_steps))
    if B % num_steps != 0:
        num_steps = B                # fall back to one image per step
    Bt = B // num_steps

    flops = B * (4 * C * HW * HW + 4 * C * C * HW + 2 * HW * HW)
    transcendentals = B * (HW * HW + HW)
    bytes_accessed = 2 * B * C * HW * 4 + (2 * C * C + 2 * C) * 4

    out = pl.pallas_call(
        functools.partial(_cca_kernel, C=C, Bt=Bt),
        out_shape=jax.ShapeDtypeStruct((B, C, HW), jnp.float32),
        grid=(num_steps,),
        in_specs=[
            pl.BlockSpec((Bt, C, HW), lambda b: (b, 0, 0)),   # x
            pl.BlockSpec((2 * C, C), lambda b: (0, 0)),       # packed weights
            pl.BlockSpec((C, 2), lambda b: (0, 0)),           # packed bias vecs
        ],
        out_specs=pl.BlockSpec((Bt, C, HW), lambda b: (b, 0, 0)),
        compiler_params=pltpu.CompilerParams(
            dimension_semantics=("parallel",)),
        cost_estimate=pl.CostEstimate(flops=flops,
                                      transcendentals=transcendentals,
                                      bytes_accessed=bytes_accessed),
    )(x, w_packed, b_packed)

    # (B, C, HW) -> NCHW: pure reshape.
    return out.reshape(B, C, H, W)


def _reference(x_nchw, wq, bq, wk, bk, wv, bv):
    """Pure-JAX reference mirroring the PyTorch forward exactly (f32 matmuls)."""
    B, C, H, W = x_nchw.shape
    HW = H * W
    hp = jax.lax.Precision.HIGHEST
    xf = x_nchw.reshape(B, C, HW)                                       # (B, C, HW)
    q = jnp.einsum("oc,bch->boh", wq.T, xf, precision=hp) + bq[None, :, None]
    k = jnp.einsum("oc,bch->boh", wk.T, xf, precision=hp) + bk[None, :, None]
    v = jnp.einsum("oc,bch->boh", wv.T, xf, precision=hp) + bv[None, :, None]
    att = jnp.einsum("bci,bcj->bij", q, k, precision=hp)                # (B, HW, HW)
    att = jax.nn.softmax(att, axis=-1)
    out = jnp.einsum("bci,bij->bcj", v, att, precision=hp).reshape(B, C, H, W)
    return out + x_nchw


if __name__ == "__main__":
    B, C, H, W = 2, 16, 16, 16       # in_channels=16 -> bottleneck = 2
    Cb = C // 8

    key = jax.random.PRNGKey(0)
    kx, kwq, kbq, kwk, kbk, kwv, kbv = jax.random.split(key, 7)

    x = jax.random.normal(kx, (B, C, H, W), dtype=jnp.float32)

    # Deterministic synthetic parameters (shapes from nn.Conv2d(C, Cb/C, 1)),
    # stored as (in_channels, out_channels) for the channel-matmul formulation.
    scale = 1.0 / jnp.sqrt(jnp.float32(C))
    wq = jax.random.uniform(kwq, (C, Cb), jnp.float32, -scale, scale)
    bq = jax.random.uniform(kbq, (Cb,), jnp.float32, -scale, scale)
    wk = jax.random.uniform(kwk, (C, Cb), jnp.float32, -scale, scale)
    bk = jax.random.uniform(kbk, (Cb,), jnp.float32, -scale, scale)
    wv = jax.random.uniform(kwv, (C, C), jnp.float32, -scale, scale)
    bv = jax.random.uniform(kbv, (C,), jnp.float32, -scale, scale)

    out = criss_cross_attention(x, wq, bq, wk, bk, wv, bv)
    out = jax.block_until_ready(out)

    ref = _reference(x, wq, bq, wk, bk, wv, bv)
    assert out.shape == (B, C, H, W)
    # Tolerance 1e-2 accounts for bf16 matmul operands (logits and out), the
    # bf16-accumulated row sums, and the approx (EUP) softmax reciprocal.
    assert jnp.allclose(out, ref, atol=1e-2, rtol=1e-2), "mismatch vs reference"

    print("KERNEL_OK")
</pallas_src>

<mosaic_0001>
module attributes {stable_mosaic.version = 11 : i64} {
  func.func @_cca_kernel(%arg0: i32, %arg1: memref<1x16x256xf32, #tpu.memory_space<vmem>>, %arg2: memref<32x16xf32, #tpu.memory_space<vmem>>, %arg3: memref<16x2xf32, #tpu.memory_space<vmem>>, %arg4: memref<1x16x256xf32, #tpu.memory_space<vmem>>) attributes {dimension_semantics = [#tpu.dimension_semantics<parallel>], iteration_bounds = array<i64: 2>, scalar_prefetch = 0 : i64, scratch_operands = 0 : i64, tpu.core_type = #tpu.core_type<tc>, window_params = [{transform_indices = @transform_0, window_bounds = array<i64: 1, 16, 256>}, {pipeline_mode = #tpu.pipeline_mode<synchronous>, transform_indices = @transform_1, window_bounds = array<i64: 32, 16>}, {pipeline_mode = #tpu.pipeline_mode<synchronous>, transform_indices = @transform_2, window_bounds = array<i64: 16, 2>}, {transform_indices = @transform_3, window_bounds = array<i64: 1, 16, 256>}]} {
    %c0 = arith.constant 0 : index
    %c0_0 = arith.constant 0 : index
    %0 = vector.load %arg2[%c0, %c0_0] : memref<32x16xf32, #tpu.memory_space<vmem>>, vector<16x16xf32>
    %c16 = arith.constant 16 : index
    %c0_1 = arith.constant 0 : index
    %1 = vector.load %arg2[%c16, %c0_1] : memref<32x16xf32, #tpu.memory_space<vmem>>, vector<16x16xf32>
    %c0_2 = arith.constant 0 : index
    %c0_3 = arith.constant 0 : index
    %2 = vector.load %arg3[%c0_2, %c0_3] : memref<16x2xf32, #tpu.memory_space<vmem>>, vector<16x1xf32>
    %c0_4 = arith.constant 0 : index
    %c1 = arith.constant 1 : index
    %3 = vector.load %arg3[%c0_4, %c1] : memref<16x2xf32, #tpu.memory_space<vmem>>, vector<16x1xf32>
    %c0_5 = arith.constant 0 : index
    %c0_6 = arith.constant 0 : index
    %c0_7 = arith.constant 0 : index
    %4 = vector.load %arg1[%c0_5, %c0_6, %c0_7] : memref<1x16x256xf32, #tpu.memory_space<vmem>>, vector<1x16x256xf32>
    %5 = vector.shape_cast %4 : vector<1x16x256xf32> to vector<16x256xf32>
    %cst = arith.constant dense<0.000000e+00> : vector<16x256xf32>
    %6 = tpu.matmul %0, %5, %cst {dimension_numbers = #tpu.dot_dimension_numbers<[1], [0], [0], [1], [0, 0, 1, 1], [], []>} : vector<16x16xf32>, vector<16x256xf32>, vector<16x256xf32> -> vector<16x256xf32>
    %cst_8 = arith.constant dense<0.000000e+00> : vector<16x256xf32>
    %7 = tpu.matmul %1, %5, %cst_8 {dimension_numbers = #tpu.dot_dimension_numbers<[1], [0], [0], [1], [0, 0, 1, 1], [], []>} : vector<16x16xf32>, vector<16x256xf32>, vector<16x256xf32> -> vector<16x256xf32>
    %8 = vector.broadcast %3 : vector<16x1xf32> to vector<16x256xf32>
    %9 = arith.addf %7, %8 : vector<16x256xf32>
    %10 = arith.truncf %5 : vector<16x256xf32> to vector<16x256xbf16>
    %11 = arith.truncf %6 : vector<16x256xf32> to vector<16x256xbf16>
    %cst_9 = arith.constant dense<0.000000e+00> : vector<256x256xf32>
    %12 = tpu.matmul %10, %11, %cst_9 {dimension_numbers = #tpu.dot_dimension_numbers<[0], [0], [1], [1], [0, 1, 1, 1], [], []>} : vector<16x256xbf16>, vector<16x256xbf16>, vector<256x256xf32> -> vector<256x256xf32>
    %13 = vector.broadcast %2 : vector<16x1xf32> to vector<16x256xf32>
    %14 = arith.mulf %13, %5 : vector<16x256xf32>
    %cst_10 = arith.constant dense<0.000000e+00> : vector<256xf32>
    %15 = vector.multi_reduction <add>, %14, %cst_10 [0] : vector<16x256xf32> to vector<256xf32>
    %16 = vector.shape_cast %15 : vector<256xf32> to vector<1x256xf32>
    %17 = vector.broadcast %16 : vector<1x256xf32> to vector<256x256xf32>
    %18 = arith.addf %12, %17 : vector<256x256xf32>
    %cst_11 = arith.constant dense<0xFF800000> : vector<256xf32>
    %19 = vector.multi_reduction <maximumf>, %18, %cst_11 [1] : vector<256x256xf32> to vector<256xf32>
    %20 = vector.shape_cast %19 : vector<256xf32> to vector<256x1xf32>
    %21 = vector.broadcast %20 : vector<256x1xf32> to vector<256x256xf32>
    %22 = arith.subf %18, %21 : vector<256x256xf32>
    %23 = math.exp %22 : vector<256x256xf32>
    %24 = arith.truncf %23 : vector<256x256xf32> to vector<256x256xbf16>
    %cst_12 = arith.constant 1.000000e+00 : bf16
    %25 = vector.broadcast %cst_12 : bf16 to vector<1x256xbf16>
    %cst_13 = arith.constant dense<0.000000e+00> : vector<1x256xf32>
    %26 = tpu.matmul %25, %24, %cst_13 {dimension_numbers = #tpu.dot_dimension_numbers<[1], [1], [0], [0], [0, 0, 1, 0], [], []>} : vector<1x256xbf16>, vector<256x256xbf16>, vector<1x256xf32> -> vector<1x256xf32>
    %27 = tpu.reciprocal %26 {approx = true} : vector<1x256xf32> -> vector<1x256xf32>
    %28 = vector.broadcast %27 : vector<1x256xf32> to vector<16x256xf32>
    %29 = arith.mulf %9, %28 : vector<16x256xf32>
    %30 = arith.truncf %29 : vector<16x256xf32> to vector<16x256xbf16>
    %cst_14 = arith.constant dense<0.000000e+00> : vector<16x256xf32>
    %31 = tpu.matmul %30, %24, %cst_14 {dimension_numbers = #tpu.dot_dimension_numbers<[1], [0], [0], [1], [0, 0, 1, 1], [], []>} : vector<16x256xbf16>, vector<256x256xbf16>, vector<16x256xf32> -> vector<16x256xf32>
    %32 = arith.addf %31, %5 : vector<16x256xf32>
    %c0_15 = arith.constant 0 : index
    %c0_16 = arith.constant 0 : index
    %c0_17 = arith.constant 0 : index
    %33 = vector.load %arg4[%c0_15, %c0_16, %c0_17] : memref<1x16x256xf32, #tpu.memory_space<vmem>>, vector<1x16x256xf32>
    %34 = vector.shape_cast %33 : vector<1x16x256xf32> to vector<16x256xf32>
    %35 = vector.shape_cast %32 : vector<16x256xf32> to vector<1x16x256xf32>
    tpu.vector_store %arg4[%c0_15, %c0_16, %c0_17], %35 {strides = array<i32>} : memref<1x16x256xf32, #tpu.memory_space<vmem>>, vector<1x16x256xf32>,
    return
  }
  func.func @transform_0(%arg0: i32) -> (i32, i32, i32) {
    %c0_i32 = arith.constant 0 : i32
    %c0_i32_0 = arith.constant 0 : i32
    %c0_i32_1 = arith.constant 0 : i32
    return %arg0, %c0_i32, %c0_i32_0 : i32, i32, i32
  }
  func.func @transform_1(%arg0: i32) -> (i32, i32) {
    %c0_i32 = arith.constant 0 : i32
    %c0_i32_0 = arith.constant 0 : i32
    %c0_i32_1 = arith.constant 0 : i32
    return %c0_i32, %c0_i32_0 : i32, i32
  }
  func.func @transform_2(%arg0: i32) -> (i32, i32) {
    %c0_i32 = arith.constant 0 : i32
    %c0_i32_0 = arith.constant 0 : i32
    %c0_i32_1 = arith.constant 0 : i32
    return %c0_i32, %c0_i32_0 : i32, i32
  }
  func.func @transform_3(%arg0: i32) -> (i32, i32, i32) {
    %c0_i32 = arith.constant 0 : i32
    %c0_i32_0 = arith.constant 0 : i32
    %c0_i32_1 = arith.constant 0 : i32
    return %arg0, %c0_i32, %c0_i32_0 : i32, i32, i32
  }
}

</mosaic_0001>

<bundles_post_ra>
// kernel: tpu_custom_call.1
= control target key start
LH: loop header
LB: loop body
LE: loop exit
PB: predicated region body
PF: predicated region fallthrough
CT: control target
= control target key end

     0   :  { %8 = vsyncpa [#allocation3], 0  ;;  %s2152_s0 = inlined_call_operand.hbm [shape: f32[2,16,256], index: 0, kind: input, shape index: {}]   ;;  %s2153_s1 = inlined_call_operand.vmem [shape: f32[32,16], index: 1, kind: input, shape index: {}]   ;;  %s2154_s2 = inlined_call_operand.vmem [shape: f32[16,2], index: 2, kind: input, shape index: {}]   ;;  %s2155_s3 = inlined_call_operand.hbm [shape: f32[2,16,256], index: 3, kind: output, shape index: {}]  }
   0x1   :  { %10 = vsyncpa [#allocation3 + $0x1], 0 }
   0x2   :  { %11 = vsyncpa [#allocation4], 0 }
   0x3   :  { %13 = vsyncpa [#allocation4 + $0x1], 0  ;;  %s1560_s12 = smov 0   ;;  %s1562_s13 = smov 0  }
   0x4   :  { %s1564_s14 = smov 0   ;;  %s1566_s15 = smov 0  }
   0x5 LB: > { %s1581_s16 = sadd.s32 4294967295, %s1528_s15   ;;  %s1192_s17 = sadd.s32 4294967294, %s1528_s15   ;;  %s1528_s15 = sphi %s1566_s15, %s2209_s15   ;;  %s1524_s14 = sphi %s1564_s14, %s2208_s14   ;;  %s1520_s13 = sphi %s1562_s13, %s2207_s13   ;;  %s1516_s12 = sphi %s1560_s12, %s2206_s12  }
   0x6   : > { %s1585_s18 = sadd.s32 1, %s1528_s15   ;;  %s26_s19 = sadd.s32 1, %s1524_s14 }
   0x7   : > { %s23_s20 = ssub.s32 %s1528_s15, %s1585_s18  ;;  %p33_p0 = scmp.ne.s32.totalorder %s1524_s14, %s1520_s13 }
   0x8   : > { %p24_p1 = scmp.eq.s32.totalorder %s23_s20, 0  ;;  %p34_p2 = scmp.eq.s32.totalorder %s1528_s15, 0 }
   0x9   : > { %p39_p3 = scmp.ne.s32.totalorder %s1520_s13, %s1516_s12  ;;  %p40_p4 = scmp.eq.s32.totalorder %s1581_s16, 0 }
   0xa   : > { %s1597_s21 = scalar_select %p24_p1, %s1524_s14, %s26_s19  }
   0xb   : > { %p1599_p5 = por %p34_p2, %p33_p0  ;;  %p1603_p6 = por %p40_p4, %p39_p3 }
   0xc   : > { %p105_p7 = scmp.eq.s32.totalorder %s1581_s16, 1  ;;  %p111_p8 = scmp.eq.s32.totalorder %s1192_s17, 1 }
   0xd   : > { %p1250_p10 = scmp.lt.s32.totalorder %s1528_s15, 2  ;;  %s137_s26 = sand.u32 1, %s1524_s14  }
   0xe   : > { %p1610_p11 = por %p105_p7, %p33_p0  ;;  %p1614_p12 = por %p111_p8, %p39_p3 }
   0xf   : > { %s1226_s27 = sshll.u32 %s1528_s15, 9  ;;  %s1195_s28 = sshll.u32 %s137_s26, 5 }
  0x10   : > { %s2173_s24 = scalar_select %p1610_p11, 1, 0 }
  0x11   : > { %s2174_s25 = scalar_select %p1614_p12, 1, 0 }
  0x12   : > { %s1623_s4 = scalar_lea.hbm %s2152_s0, %s1226_s27  ;;  %s141_s5 = scalar_lea.vmem [#allocation2], %s1195_s28 }
  0x13   : > { %s148_s6 = sshll.u32 %s141_s5, 4  ;;  %p1627_p13 = pnand %p1250_p10, %p1599_p5  ;;  %s1631_s6 = int_to_ptr.vmem [resolvable:$true] %s148_s6 }
  0x14   : > { %s1633_s8 = scalar_lea.sflag [#allocation3], %s137_s26  ;;  %s1432_s9 = scalar_lea.hbm %s1623_s4, 512 }
  0x15   : > { %p1433_p0 = scmp.ne.s32.totalorder %s1623_s4, %s1432_s9  ;;  %p1434_p1 = pneg %p1627_p13 }
  0x16   : > { %s1437_s17 = scalar_lea.hbm %s2152_s0, 1024  ;;  %p1438_p4 = scmp.lt.u32.totalorder %s1623_s4, %s2152_s0 }
  0x17   : > { %p1435_p2 = pnand %p1434_p1, %p1433_p0  ;;  %p1439_p5 = scmp.lt.u32.totalorder %s1437_s17, %s1432_s9 }
  0x18   : > { %p1441_p8 = scmp.lt.u32.totalorder %s1432_s9, %s1623_s4 }
  0x19   : > { %p1436_p3 = pneg %p1435_p2  ;;  %p1440_p7 = por %p1439_p5, %p1438_p4 }
  0x1b   : > { %p1442_p10 = por %p1441_p8, %p1440_p7 }
  0x1d   : > { %p1443_p9 = pnand %p1442_p10, %p1436_p3 }
  0x1f   : > { %1446 = shalt.err (!%p1443_p9)
}
  0x20   : > { %s1447_s22 = scalar_lea.vmem %s1631_s6, 512  ;;  %s1530_s26 = smov [#allocation2]  }
  0x21   : > { %p1448_p0 = scmp.ne.s32.totalorder %s1631_s6, %s1447_s22  ;;  %s1452_s27 = sshll.u32 %s1530_s26, 4  ;;  %s1453_s27 = int_to_ptr.vmem [resolvable:$false] %s1452_s27 }
  0x22   : > { %s1454_s28 = scalar_lea.vmem %s1453_s27, 1024  ;;  %p1455_p11 = scmp.lt.s32.totalorder %s1631_s6, %s1453_s27 }
  0x23   : > { %p1450_p2 = pnand %p1448_p0, %p1434_p1  ;;  %p1456_p4 = scmp.lt.s32.totalorder %s1454_s28, %s1447_s22 }
  0x25   : > { %p1451_p12 = pneg %p1450_p2  ;;  %p1457_p5 = por %p1456_p4, %p1455_p11 }
  0x27   : > { %p1458_p7 = pnand %p1457_p5, %p1451_p12 }
  0x29   : > { %1461 = shalt.err (!%p1458_p7)
}
  0x2a   : > { %s1531_s29 = smov 256   ;;  %s1532_s30 = smov 16  }
  0x2b   : > { %1245 = dma.hbm_to_vmem [thread:$0]  (!%p1627_p13), %s1623_s4, 512, %s1631_s6, %s1633_s8, %s1531_s29, %s1531_s29, %s1532_s30  }
  0x2c   : > { %p1198_p9 = scmp.ge.s32.totalorder %s1528_s15, 1  ;;  %p156_p1 = scmp.lt.s32.totalorder %s1528_s15, 3 }
  0x2e   : > { %p157_p3 = pnand %p1198_p9, %p156_p1 }
  0x30   : > { %160 = sbr.rel (%p157_p3) target bundleno = 1257 (0x4e9), region = 32 }
  0x37   : > { %s1664_s5 = sand.u32 1, %s1520_s13  }
  0x38   : > { %s1199_s9 = sshll.u32 %s1664_s5, 5  ;;  %s163_s10 = scalar_lea.sflag [#allocation3], %s1664_s5 }
  0x39   : > { %s1670_s11 = scalar_lea.vmem [#allocation2], %s1199_s9 }
  0x3a   : > { %1507 = dma.done.wait (%p1603_p6), %s163_s10, 512  }
  0x3b   : > { %1509 = vsyncadd (%p1603_p6), %s163_s10, 4294966784  ;;  %v1533_v0 = vmov 0.0   ;;  %v1679_v1 = vld [vmem:[%s1670_s11 + $0x8] sm:$0xff]  ;;  %v1682_v2 = vld [vmem:[%s1670_s11 + $0x18] sm:$0xff]  ;;  %vm201_vm0 = vcmask 130048   ;;  %v2157_v9 = vmov 0  }
  0x3c   : > { %272 = vmatprep.mubr.f32.mxu0 %v1533_v0  ;;  %278 = vmatprep.mubr.f32.mxu1 %v1533_v0  ;;  %v1685_v3 = vld [vmem:[%s1670_s11] sm:$0xff]  ;;  %v1228_v4 = vpack.c.bf16 %v1682_v2, %v1679_v1  ;;  %v1690_v5 = vld [vmem:[%s1670_s11 + $0x10] sm:$0xff]  ;;  %v192_v8 = vld [vmem:[%s2153_s1 + $0x8] sm:$0xff]  ;;  %s188_s29 = scalar_lea.vmem [#allocation5], %s1199_s9  ;;  %s1227_s10 = sshll.u32 %s1581_s16, 9 }
  0x3d   : > { %v1230_v6 = vpack.c.bf16 %v1690_v5, %v1685_v3  ;;  %v191_v7 = vld [vmem:[%s2153_s1] sm:$0xff]  ;;  %1292 = vset.pattern.permute.xlu1 %v2157_v9  ;;  %v1714_v11 = vld [vmem:[%s2154_s2 + $0x8] sm:$0xff]  ;;  %s1119_s30 = sshll.u32 %s188_s29, 4  ;;  %s2107_s16 = scalar_lea.hbm %s2155_s3, %s1227_s10  ;;  %s2100_s30 = int_to_ptr.vmem [resolvable:$true] %s1119_s30 }
  0x3e   : > { %1229 = vmatprep.subr.bf16.mxu0 %v1228_v4  ;;  %1236 = vmatprep.subr.bf16.mxu1 %v1228_v4  ;;  %v1708_v10 = vld [vmem:[%s2154_s2] sm:$0xff]  ;;  %s1106_s4 = scalar_lea.sflag [#allocation4], %s1664_s5  ;;  %s1462_s6 = scalar_lea.vmem %s2100_s30, 512 }
  0x3f   : > { %1231 = vmatpush1.bf16.msra.mxu0 %v1230_v6  ;;  %1237 = vmatpush1.bf16.msra.mxu1 %v1230_v6  ;;  %p1463_p6 = scmp.ne.s32.totalorder %s2100_s30, %s1462_s6  ;;  %p2203_p11 = scmp.ne.s32.totalorder %s2173_s24, 0 }
  0x40   : > { %408 = vxpose.xlu0.c.b16.start.end [1/1] (short) %v1230_v6, 128  ;;  %1233 = vmatprep.subr.bf16.mxu1 %v1228_v4  ;;  %s1537_s7 = smov [#allocation5]  }
  0x41   : > { %383 = vperm.xlu1 %1292, %v1708_v10   ;;  %p1464_p12 = pnand %p1463_p6, %p2203_p11  ;;  %s1466_s8 = sshll.u32 %s1537_s7, 4  ;;  %s1467_s8 = int_to_ptr.vmem [resolvable:$false] %s1466_s8 }
  0x42   : > { %1201 = vmatmul.mubr.msk.f32.vlgmr.msra.gmra.mrb[0].mxu0 %vm201_vm0, %v191_v7  ;;  %1202 = vmatmul.mubr.msk.f32.vlgmr.msra.gmra.mrb[0].mxu1 %vm201_vm0, %v192_v8  ;;  %s1468_s17 = scalar_lea.vmem %s1467_s8, 1024  ;;  %p1469_p8 = scmp.lt.s32.totalorder %s2100_s30, %s1467_s8 }
  0x43   : > { %1235 = vmatpush1.bf16.msra.mxu1 %v1230_v6  ;;  %365 = vmatprep.mubr.f32.mxu1 %v1533_v0  ;;  %p1465_p13 = pneg %p1464_p12  ;;  %p1470_p10 = scmp.lt.s32.totalorder %s1468_s17, %s1462_s6 }
  0x44   : > { %520 = vmatprep.mubr.bf16.mxu0 %v2157_v9 }
  0x45   : > { %387 = vperm.xlu1 %1292, %v1714_v11   ;;  %p1471_p0 = por %p1470_p10, %p1469_p8 }
  0x47   : > { %p1472_p2 = pnand %p1471_p0, %p1465_p13 }
  0x5d   : > { %424 = vxpose.xlu0.c.b16.start.end [1/1] (short) %v1228_v4, 128 }
  0xa6   : > { %v416_v18 = vpop.trf.xlu0 }
  0xaa   : > { %v417_v19 = vpop.trf.xlu0 }
  0xae   : > { %v418_v20 = vpop.trf.xlu0 }
  0xb2   : > { %v419_v21 = vpop.trf.xlu0 }
  0xb6   : > { %v420_v22 = vpop.trf.xlu0 }
  0xba   : > { %v421_v23 = vpop.trf.xlu0 }
  0xbe   : > { %v422_v24 = vpop.trf.xlu0 }
  0xc0   : > { %v384_v34 = vpop.permute.xlu1 %383 }
  0xc1   : > { %v390_v36 = vmul.f32 %v384_v34, %v1685_v3  ;;  %v391_v38 = vmul.f32 %v384_v34, %v1679_v1 }
  0xc2   : > { %v423_v25 = vpop.trf.xlu0 }
  0xc4   : > { %v388_v35 = vpop.permute.xlu1 %387 }
  0xc5   : > { %v392_v37 = vmul.f32 %v388_v35, %v1690_v5  ;;  %v393_v39 = vmul.f32 %v388_v35, %v1682_v2 }
  0xc6   : > { %v432_v26 = vpop.trf.xlu0 }
  0xc7   : > { %v394_v40 = vadd.f32 %v392_v37, %v390_v36  ;;  %v401_v41 = vadd.f32 %v393_v39, %v391_v38 }
  0xc9   : > { %v395_v42 = vrot.slane %v394_v40, 4  ;;  %v402_v43 = vrot.slane %v401_v41, 4 }
  0xca   : > { %v433_v27 = vpop.trf.xlu0 }
  0xcb   : > { %v396_v44 = vadd.f32 %v395_v42, %v394_v40  ;;  %v403_v45 = vadd.f32 %v402_v43, %v401_v41 }
  0xcd   : > { %v397_v46 = vrot.slane %v396_v44, 2  ;;  %v404_v47 = vrot.slane %v403_v45, 2 }
  0xce   : > { %v434_v28 = vpop.trf.xlu0 }
  0xcf   : > { %v398_v48 = vadd.f32 %v397_v46, %v396_v44  ;;  %v405_v49 = vadd.f32 %v404_v47, %v403_v45  ;;  %v193_v45 = vld [vmem:[%s2153_s1 + $0x10] sm:$0xff] }
  0xd0   : > { %1203 = vmatmul.mubr.msk.f32.vlgmr.msra.gmra.mrb[2].mxu1 %vm201_vm0, %v193_v45 }
  0xd1   : > { %v399_v50 = vrot.slane %v398_v48, 1  ;;  %v406_v51 = vrot.slane %v405_v49, 1  ;;  %371 = vmatprep.mubr.f32.mxu1 %v1533_v0 }
  0xd2   : > { %v435_v29 = vpop.trf.xlu0 }
  0xd3   : > { %v1752_v52 = vadd.f32 %v399_v50, %v398_v48  ;;  %v1754_v53 = vadd.f32 %v406_v51, %v405_v49 }
  0xd6   : > { %v436_v30 = vpop.trf.xlu0 }
  0xda   : > { %v437_v31 = vpop.trf.xlu0 }
  0xde   : > { %v438_v32 = vpop.trf.xlu0 }
  0xe2   : > { %v439_v33 = vpop.trf.xlu0 }
 0x115   : > { %v274_v12 = vpop.f32.mrb[0].mxu0  ;;  %v280_v13 = vpop.f32.mrb[0].mxu1 }
 0x116   : > { %v380_v14 = vpack.c.bf16 %v280_v13, %v274_v12  ;;  %v276_v15 = vpop.f32.mrb[1].mxu0  ;;  %v282_v16 = vpop.f32.mrb[1].mxu1 }
 0x117   : > { %v381_v17 = vpack.c.bf16 %v282_v16, %v276_v15 }
 0x119   : > { %488 = vmatprep.subr.bf16.mxu0 %v381_v17 }
 0x11a   : > { %489 = vmatpush1.bf16.msra.mxu0 %v380_v14 }
 0x11d   : > { %1205 = vmatmul.mubr.msk.bf16.vlgmr.msra.gmra.mrb[4].mxu0 %vm201_vm0, %v416_v18 }
 0x11e   : > { %530 = vmatprep.mubr.bf16.mxu0 %v2157_v9 }
 0x125   : > { %1206 = vmatmul.mubr.msk.bf16.gmra.mrb[8].mxu0 %vm201_vm0, %v417_v19 }
 0x126   : > { %540 = vmatprep.mubr.bf16.mxu0 %v2157_v9 }
 0x12d   : > { %1207 = vmatmul.mubr.msk.bf16.gmra.mrb[12].mxu0 %vm201_vm0, %v418_v20 }
 0x12e   : > { %550 = vmatprep.mubr.bf16.mxu0 %v2157_v9 }
 0x135   : > { %1208 = vmatmul.mubr.msk.bf16.gmra.mrb[16].mxu0 %vm201_vm0, %v419_v21 }
 0x136   : > { %560 = vmatprep.mubr.bf16.mxu0 %v2157_v9 }
 0x13d   : > { %1209 = vmatmul.mubr.msk.bf16.gmra.mrb[20].mxu0 %vm201_vm0, %v420_v22 }
 0x13e   : > { %570 = vmatprep.mubr.bf16.mxu0 %v2157_v9 }
 0x145   : > { %1210 = vmatmul.mubr.msk.bf16.gmra.mrb[24].mxu0 %vm201_vm0, %v421_v23 }
 0x146   : > { %580 = vmatprep.mubr.bf16.mxu0 %v2157_v9 }
 0x14d   : > { %1211 = vmatmul.mubr.msk.bf16.gmra.mrb[28].mxu0 %vm201_vm0, %v422_v24 }
 0x14e   : > { %590 = vmatprep.mubr.bf16.mxu0 %v2157_v9 }
 0x155   : > { %1212 = vmatmul.mubr.msk.bf16.gmra.mrb[32].mxu0 %vm201_vm0, %v423_v25 }
 0x156   : > { %600 = vmatprep.mubr.bf16.mxu0 %v2157_v9 }
 0x15d   : > { %1213 = vmatmul.mubr.msk.bf16.gmra.mrb[36].mxu0 %vm201_vm0, %v432_v26 }
 0x15e   : > { %610 = vmatprep.mubr.bf16.mxu0 %v2157_v9 }
 0x165   : > { %1214 = vmatmul.mubr.msk.bf16.gmra.mrb[40].mxu0 %vm201_vm0, %v433_v27 }
 0x166   : > { %620 = vmatprep.mubr.bf16.mxu0 %v2157_v9 }
 0x16d   : > { %1215 = vmatmul.mubr.msk.bf16.gmra.mrb[44].mxu0 %vm201_vm0, %v434_v28 }
 0x16e   : > { %630 = vmatprep.mubr.bf16.mxu0 %v2157_v9 }
 0x175   : > { %1216 = vmatmul.mubr.msk.bf16.gmra.mrb[48].mxu0 %vm201_vm0, %v435_v29 }
 0x176   : > { %640 = vmatprep.mubr.bf16.mxu0 %v2157_v9 }
 0x17d   : > { %1217 = vmatmul.mubr.msk.bf16.gmra.mrb[52].mxu0 %vm201_vm0, %v436_v30 }
 0x17e   : > { %650 = vmatprep.mubr.bf16.mxu0 %v2157_v9 }
 0x185   : > { %1218 = vmatmul.mubr.msk.bf16.gmra.mrb[56].mxu0 %vm201_vm0, %v437_v31 }
 0x186   : > { %660 = vmatprep.mubr.bf16.mxu0 %v2157_v9 }
 0x18d   : > { %1219 = vmatmul.mubr.msk.bf16.gmra.mrb[60].mxu0 %vm201_vm0, %v438_v32 }
 0x18e   : > { %670 = vmatprep.mubr.bf16.mxu0 %v2157_v9 }
 0x195   : > { %1220 = vmatmul.mubr.msk.bf16.gmra.mrb[64].mxu0 %vm201_vm0, %v439_v33 }
 0x1f0   : > { %v522_v54 = vpop.f32.mrb[4].mxu0 }
 0x1f1   : > { %v1757_v55 = vadd.f32 %v522_v54, %v1752_v52  ;;  %v524_v56 = vpop.f32.mrb[5].mxu0 }
 0x1f2   : > { %v1760_v57 = vadd.f32 %v524_v56, %v1754_v53  ;;  %v526_v58 = vpop.f32.mrb[6].mxu0 }
 0x1f3   : > { %v1763_v59 = vadd.f32 %v526_v58, %v1752_v52  ;;  %v528_v60 = vpop.f32.mrb[7].mxu0 }
 0x1f4   : > { %v1766_v61 = vadd.f32 %v528_v60, %v1754_v53  ;;  %v681_v62 = vmax.f32 %v1757_v55, %v1760_v57 }
 0x1f6   : > { %682 = vmax.xlane.f32.xlu1 %v681_v62  ;;  %v684_v63 = vmax.f32 %v1763_v59, %v1766_v61 }
 0x1f8   : > { %v532_v1 = vpop.f32.mrb[8].mxu0  ;;  %685 = vmax.xlane.f32.xlu0 %v684_v63 }
 0x1f9   : > { %v1773_v2 = vadd.f32 %v532_v1, %v1752_v52  ;;  %v534_v3 = vpop.f32.mrb[9].mxu0 }
 0x1fa   : > { %v1776_v4 = vadd.f32 %v534_v3, %v1754_v53  ;;  %v536_v5 = vpop.f32.mrb[10].mxu0 }
 0x1fb   : > { %v538_v6 = vpop.f32.mrb[11].mxu0  ;;  %v1779_v7 = vadd.f32 %v536_v5, %v1752_v52 }
 0x1fc   : > { %v1782_v8 = vadd.f32 %v538_v6, %v1754_v53  ;;  %v687_v12 = vmax.f32 %v1773_v2, %v1776_v4 }
 0x1fe   : > { %688 = vmax.xlane.f32.xlu1 %v687_v12  ;;  %v690_v14 = vmax.f32 %v1779_v7, %v1782_v8 }
 0x200   : > { %v542_v13 = vpop.f32.mrb[12].mxu0 }
 0x201   : > { %v1789_v15 = vadd.f32 %v542_v13, %v1752_v52  ;;  %v544_v16 = vpop.f32.mrb[13].mxu0 }
 0x202   : > { %v1792_v17 = vadd.f32 %v544_v16, %v1754_v53  ;;  %v546_v18 = vpop.f32.mrb[14].mxu0  ;;  %691 = vmax.xlane.f32.xlu1 %v690_v14 }
 0x203   : > { %v548_v19 = vpop.f32.mrb[15].mxu0  ;;  %v1795_v20 = vadd.f32 %v546_v18, %v1752_v52 }
 0x204   : > { %v1798_v21 = vadd.f32 %v548_v19, %v1754_v53  ;;  %v693_v22 = vmax.f32 %v1789_v15, %v1792_v17 }
 0x206   : > { %694 = vmax.xlane.f32.xlu1 %v693_v22  ;;  %v696_v24 = vmax.f32 %v1795_v20, %v1798_v21 }
 0x208   : > { %v552_v23 = vpop.f32.mrb[16].mxu0 }
 0x209   : > { %v1805_v25 = vadd.f32 %v552_v23, %v1752_v52  ;;  %v554_v26 = vpop.f32.mrb[17].mxu0 }
 0x20a   : > { %v1808_v27 = vadd.f32 %v554_v26, %v1754_v53  ;;  %v556_v28 = vpop.f32.mrb[18].mxu0  ;;  %697 = vmax.xlane.f32.xlu1 %v696_v24 }
 0x20b   : > { %v558_v29 = vpop.f32.mrb[19].mxu0  ;;  %v1811_v30 = vadd.f32 %v556_v28, %v1752_v52 }
 0x20c   : > { %v1814_v31 = vadd.f32 %v558_v29, %v1754_v53  ;;  %v699_v32 = vmax.f32 %v1805_v25, %v1808_v27 }
 0x20e   : > { %700 = vmax.xlane.f32.xlu1 %v699_v32  ;;  %v702_v34 = vmax.f32 %v1811_v30, %v1814_v31 }
 0x210   : > { %v562_v33 = vpop.f32.mrb[20].mxu0 }
 0x211   : > { %v1821_v35 = vadd.f32 %v562_v33, %v1752_v52  ;;  %v564_v36 = vpop.f32.mrb[21].mxu0 }
 0x212   : > { %v1824_v37 = vadd.f32 %v564_v36, %v1754_v53  ;;  %v566_v38 = vpop.f32.mrb[22].mxu0  ;;  %703 = vmax.xlane.f32.xlu1 %v702_v34 }
 0x213   : > { %v568_v39 = vpop.f32.mrb[23].mxu0  ;;  %v1827_v40 = vadd.f32 %v566_v38, %v1752_v52 }
 0x214   : > { %v1830_v41 = vadd.f32 %v568_v39, %v1754_v53  ;;  %v705_v42 = vmax.f32 %v1821_v35, %v1824_v37 }
 0x216   : > { %706 = vmax.xlane.f32.xlu1 %v705_v42  ;;  %v708_v44 = vmax.f32 %v1827_v40, %v1830_v41 }
 0x218   : > { %v572_v43 = vpop.f32.mrb[24].mxu0 }
 0x219   : > { %v1840_v46 = vadd.f32 %v572_v43, %v1752_v52  ;;  %v574_v47 = vpop.f32.mrb[25].mxu0 }
 0x21a   : > { %v1844_v48 = vadd.f32 %v574_v47, %v1754_v53  ;;  %v576_v49 = vpop.f32.mrb[26].mxu0  ;;  %709 = vmax.xlane.f32.xlu1 %v708_v44 }
 0x21b   : > { %v1848_v50 = vadd.f32 %v576_v49, %v1752_v52  ;;  %v578_v51 = vpop.f32.mrb[27].mxu0 }
 0x21c   : > { %v1851_v54 = vadd.f32 %v578_v51, %v1754_v53  ;;  %v711_v56 = vmax.f32 %v1840_v46, %v1844_v48 }
 0x21e   : > { %712 = vmax.xlane.f32.xlu0 %v711_v56  ;;  %v714_v58 = vmax.f32 %v1848_v50, %v1851_v54 }
 0x220   : > { %v582_v60 = vpop.f32.mrb[28].mxu0  ;;  %715 = vmax.xlane.f32.xlu1 %v714_v58 }
 0x221   : > { %v1858_v62 = vadd.f32 %v582_v60, %v1752_v52  ;;  %v584_v0 = vpop.f32.mrb[29].mxu0 }
 0x222   : > { %v1861_v63 = vadd.f32 %v584_v0, %v1754_v53  ;;  %v586_v1 = vpop.f32.mrb[30].mxu0 }
 0x223   : > { %v1864_v3 = vadd.f32 %v586_v1, %v1752_v52  ;;  %v588_v5 = vpop.f32.mrb[31].mxu0 }
 0x224   : > { %v1867_v6 = vadd.f32 %v588_v5, %v1754_v53  ;;  %v717_v12 = vmax.f32 %v1858_v62, %v1861_v63 }
 0x226   : > { %718 = vmax.xlane.f32.xlu0 %v717_v12  ;;  %v720_v13 = vmax.f32 %v1864_v3, %v1867_v6 }
 0x228   : > { %v592_v14 = vpop.f32.mrb[32].mxu0  ;;  %721 = vmax.xlane.f32.xlu1 %v720_v13 }
 0x229   : > { %v1874_v16 = vadd.f32 %v592_v14, %v1752_v52  ;;  %v594_v18 = vpop.f32.mrb[33].mxu0 }
 0x22a   : > { %v1877_v19 = vadd.f32 %v594_v18, %v1754_v53  ;;  %v596_v22 = vpop.f32.mrb[34].mxu0 }
 0x22b   : > { %v1880_v23 = vadd.f32 %v596_v22, %v1752_v52  ;;  %v598_v24 = vpop.f32.mrb[35].mxu0 }
 0x22c   : > { %v1883_v26 = vadd.f32 %v598_v24, %v1754_v53  ;;  %v723_v28 = vmax.f32 %v1874_v16, %v1877_v19 }
 0x22e   : > { %724 = vmax.xlane.f32.xlu0 %v723_v28  ;;  %v726_v29 = vmax.f32 %v1880_v23, %v1883_v26 }
 0x230   : > { %v602_v32 = vpop.f32.mrb[36].mxu0  ;;  %727 = vmax.xlane.f32.xlu1 %v726_v29 }
 0x231   : > { %v1890_v33 = vadd.f32 %v602_v32, %v1752_v52  ;;  %v604_v34 = vpop.f32.mrb[37].mxu0 }
 0x232   : > { %v1893_v36 = vadd.f32 %v604_v34, %v1754_v53  ;;  %v606_v38 = vpop.f32.mrb[38].mxu0 }
 0x233   : > { %v1896_v39 = vadd.f32 %v606_v38, %v1752_v52  ;;  %v608_v42 = vpop.f32.mrb[39].mxu0 }
 0x234   : > { %v1899_v43 = vadd.f32 %v608_v42, %v1754_v53  ;;  %v729_v44 = vmax.f32 %v1890_v33, %v1893_v36 }
 0x236   : > { %730 = vmax.xlane.f32.xlu0 %v729_v44  ;;  %v732_v45 = vmax.f32 %v1896_v39, %v1899_v43 }
 0x238   : > { %v612_v47 = vpop.f32.mrb[40].mxu0  ;;  %733 = vmax.xlane.f32.xlu1 %v732_v45 }
 0x239   : > { %v1906_v49 = vadd.f32 %v612_v47, %v1752_v52  ;;  %v614_v51 = vpop.f32.mrb[41].mxu0 }
 0x23a   : > { %v1909_v56 = vadd.f32 %v614_v51, %v1754_v53  ;;  %v616_v58 = vpop.f32.mrb[42].mxu0 }
 0x23b   : > { %v1912_v60 = vadd.f32 %v616_v58, %v1752_v52  ;;  %v618_v0 = vpop.f32.mrb[43].mxu0 }
 0x23c   : > { %v1915_v1 = vadd.f32 %v618_v0, %v1754_v53  ;;  %v735_v5 = vmax.f32 %v1906_v49, %v1909_v56 }
 0x23e   : > { %736 = vmax.xlane.f32.xlu0 %v735_v5  ;;  %v738_v12 = vmax.f32 %v1912_v60, %v1915_v1 }
 0x240   : > { %v622_v13 = vpop.f32.mrb[44].mxu0  ;;  %739 = vmax.xlane.f32.xlu1 %v738_v12 }
 0x241   : > { %v1922_v14 = vadd.f32 %v622_v13, %v1752_v52  ;;  %v624_v18 = vpop.f32.mrb[45].mxu0 }
 0x242   : > { %v1925_v22 = vadd.f32 %v624_v18, %v1754_v53  ;;  %v626_v24 = vpop.f32.mrb[46].mxu0 }
 0x243   : > { %v1928_v28 = vadd.f32 %v626_v24, %v1752_v52  ;;  %v628_v29 = vpop.f32.mrb[47].mxu0 }
 0x244   : > { %v1931_v32 = vadd.f32 %v628_v29, %v1754_v53  ;;  %v741_v34 = vmax.f32 %v1922_v14, %v1925_v22 }
 0x246   : > { %742 = vmax.xlane.f32.xlu0 %v741_v34  ;;  %v744_v38 = vmax.f32 %v1928_v28, %v1931_v32 }
 0x248   : > { %v632_v42 = vpop.f32.mrb[48].mxu0  ;;  %745 = vmax.xlane.f32.xlu1 %v744_v38 }
 0x249   : > { %v1938_v44 = vadd.f32 %v632_v42, %v1752_v52  ;;  %v634_v45 = vpop.f32.mrb[49].mxu0 }
 0x24a   : > { %v1941_v47 = vadd.f32 %v634_v45, %v1754_v53  ;;  %v636_v51 = vpop.f32.mrb[50].mxu0 }
 0x24b   : > { %v1944_v58 = vadd.f32 %v636_v51, %v1752_v52  ;;  %v638_v0 = vpop.f32.mrb[51].mxu0 }
 0x24c   : > { %v1947_v5 = vadd.f32 %v638_v0, %v1754_v53  ;;  %v747_v12 = vmax.f32 %v1938_v44, %v1941_v47 }
 0x24e   : > { %2176 = vst [vmem:[#allocation8_spill] sm:$0xff] %v1947_v5  ;;  %748 = vmax.xlane.f32.xlu0 %v747_v12  ;;  %v750_v13 = vmax.f32 %v1944_v58, %v1947_v5 }
 0x250   : > { %v642_v18 = vpop.f32.mrb[52].mxu0  ;;  %751 = vmax.xlane.f32.xlu1 %v750_v13 }
 0x251   : > { %v1954_v24 = vadd.f32 %v642_v18, %v1752_v52  ;;  %v644_v29 = vpop.f32.mrb[53].mxu0 }
 0x252   : > { %v1957_v34 = vadd.f32 %v644_v29, %v1754_v53  ;;  %v646_v38 = vpop.f32.mrb[54].mxu0 }
 0x253   : > { %2177 = vst [vmem:[#allocation9_spill] sm:$0xff] %v1954_v24  ;;  %v1960_v42 = vadd.f32 %v646_v38, %v1752_v52  ;;  %v648_v45 = vpop.f32.mrb[55].mxu0 }
 0x254   : > { %2178 = vst [vmem:[#allocation10_spill] sm:$0xff] %v1957_v34  ;;  %v1963_v51 = vadd.f32 %v648_v45, %v1754_v53  ;;  %v753_v0 = vmax.f32 %v1954_v24, %v1957_v34 }
 0x255   : > { %2179 = vst [vmem:[#allocation11_spill] sm:$0xff] %v1960_v42 }
 0x256   : > { %2180 = vst [vmem:[#allocation12_spill] sm:$0xff] %v1963_v51  ;;  %754 = vmax.xlane.f32.xlu0 %v753_v0  ;;  %v756_v12 = vmax.f32 %v1960_v42, %v1963_v51 }
 0x258   : > { %v652_v13 = vpop.f32.mrb[56].mxu0  ;;  %757 = vmax.xlane.f32.xlu1 %v756_v12 }
 0x259   : > { %v1970_v18 = vadd.f32 %v652_v13, %v1752_v52  ;;  %v654_v29 = vpop.f32.mrb[57].mxu0 }
 0x25a   : > { %v1973_v38 = vadd.f32 %v654_v29, %v1754_v53  ;;  %v656_v9 = vpop.f32.mrb[58].mxu0 }
 0x25b   : > { %2181 = vst [vmem:[#allocation13_spill] sm:$0xff] %v1970_v18  ;;  %v1976_v45 = vadd.f32 %v656_v9, %v1752_v52  ;;  %v658_v5 = vpop.f32.mrb[59].mxu0 }
 0x25c   : > { %2182 = vst [vmem:[#allocation14_spill] sm:$0xff] %v1973_v38  ;;  %v1979_v34 = vadd.f32 %v658_v5, %v1754_v53  ;;  %v759_v0 = vmax.f32 %v1970_v18, %v1973_v38 }
 0x25d   : > { %2183 = vst [vmem:[#allocation15_spill] sm:$0xff] %v1976_v45 }
 0x25e   : > { %2184 = vst [vmem:[#allocation16_spill] sm:$0xff] %v1979_v34  ;;  %760 = vmax.xlane.f32.xlu0 %v759_v0  ;;  %v762_v12 = vmax.f32 %v1976_v45, %v1979_v34 }
 0x260   : > { %v662_v13 = vpop.f32.mrb[60].mxu0  ;;  %763 = vmax.xlane.f32.xlu1 %v762_v12 }
 0x261   : > { %v1986_v29 = vadd.f32 %v662_v13, %v1752_v52  ;;  %v664_v51 = vpop.f32.mrb[61].mxu0 }
 0x262   : > { %v1989_v9 = vadd.f32 %v664_v51, %v1754_v53  ;;  %v666_v42 = vpop.f32.mrb[62].mxu0 }
 0x263   : > { %v1992_v5 = vadd.f32 %v666_v42, %v1752_v52  ;;  %v668_v24 = vpop.f32.mrb[63].mxu0 }
 0x264   : > { %2185 = vst [vmem:[#allocation17_spill] sm:$0xff] %v1989_v9  ;;  %v1995_v38 = vadd.f32 %v668_v24, %v1754_v53  ;;  %v765_v0 = vmax.f32 %v1986_v29, %v1989_v9 }
 0x266   : > { %766 = vmax.xlane.f32.xlu0 %v765_v0  ;;  %v768_v12 = vmax.f32 %v1992_v5, %v1995_v38 }
 0x268   : > { %v672_v13 = vpop.f32.mrb[64].mxu0  ;;  %769 = vmax.xlane.f32.xlu1 %v768_v12 }
 0x269   : > { %v2002_v51 = vadd.f32 %v672_v13, %v1752_v52  ;;  %v674_v34 = vpop.f32.mrb[65].mxu0  ;;  %v1535_v13 = vmov 1  }
 0x26a   : > { %v2005_v42 = vadd.f32 %v674_v34, %v1754_v53  ;;  %v676_v45 = vpop.f32.mrb[66].mxu0  ;;  %1293 = vset.pattern.permute.xlu0 %v1535_v13  ;;  %1294 = vset.pattern.permute.xlu1 %v1535_v13 }
 0x26b   : > { %v2008_v24 = vadd.f32 %v676_v45, %v1752_v52  ;;  %v678_v18 = vpop.f32.mrb[67].mxu0 }
 0x26c   : > { %2186 = vst [vmem:[#allocation18_spill] sm:$0xff] %v2005_v42  ;;  %v2011_v9 = vadd.f32 %v678_v18, %v1754_v53  ;;  %v771_v0 = vmax.f32 %v2002_v51, %v2005_v42 }
 0x26d   : > { %2187 = vst [vmem:[#allocation19_spill] sm:$0xff] %v2008_v24 }
 0x26e   : > { %2188 = vst [vmem:[#allocation20_spill] sm:$0xff] %v2011_v9  ;;  %772 = vmax.xlane.f32.xlu0 %v771_v0  ;;  %v774_v12 = vmax.f32 %v2008_v24, %v2011_v9 }
 0x270   : > { %775 = vmax.xlane.f32.xlu1 %v774_v12  ;;  %v2189_v12 = vmov 0  }
 0x281   : > { %292 = vperm.xlu1 %1294, %v1714_v11  }
 0x283   : > { %v683_v34 = vpop.xlane.xlu1 %682 }
 0x284   : > { %v777_v52 = vsub.f32 %v1757_v55, %v683_v34  ;;  %v778_v45 = vsub.f32 %v1760_v57, %v683_v34  ;;  %287 = vperm.xlu0 %1293, %v1708_v10  }
 0x285   : > { %v686_v53 = vpop.xlane.xlu0 %685 }
 0x286   : > { %v841_v18 = vmul.f32 1.442695, %v777_v52  ;;  %v843_v42 = vmul.f32 1.442695, %v778_v45  ;;  %v779_v0 = vsub.f32 %v1763_v59, %v686_v53  ;;  %v780_v9 = vsub.f32 %v1766_v61, %v686_v53 }
 0x288   : > { %1296 = vpow2.f32 %v841_v18  ;;  %v845_v24 = vmul.f32 1.442695, %v779_v0  ;;  %v847_v13 = vmul.f32 1.442695, %v780_v9  ;;  %1295 = vset.pattern.permute.xlu0 %v2189_v12 }
 0x289   : > { %1298 = vpow2.f32 %v843_v42 }
 0x28a   : > { %1300 = vpow2.f32 %v845_v24 }
 0x28b   : > { %1302 = vpow2.f32 %v847_v13  ;;  %v689_v11 = vpop.xlane.xlu1 %688  ;;  %v1536_v13 = vmov 1065369472  }
 0x28c   : > { %v781_v55 = vsub.f32 %v1773_v2, %v689_v11  ;;  %v782_v10 = vsub.f32 %v1776_v4, %v689_v11  ;;  %v194_v2 = vld [vmem:[%s2153_s1 + $0x18] sm:$0xff] }
 0x28d   : > { %1204 = vmatmul.mubr.msk.f32.gmra.mrb[4].mxu1 %vm201_vm0, %v194_v2 }
 0x28e   : > { %v849_v57 = vmul.f32 1.442695, %v781_v55  ;;  %v851_v34 = vmul.f32 1.442695, %v782_v10  ;;  %1033 = vmatprep.mubr.bf16.mxu1 %v1536_v13 }
 0x28f   : > { %v692_v52 = vpop.xlane.xlu1 %691 }
 0x290   : > { %v783_v59 = vsub.f32 %v1779_v7, %v692_v52  ;;  %v784_v61 = vsub.f32 %v1782_v8, %v692_v52  ;;  %1304 = vpow2.f32 %v849_v57 }
 0x291   : > { %1306 = vpow2.f32 %v851_v34 }
 0x292   : > { %v1297_v45 = vpop.eup %1296  ;;  %v853_v9 = vmul.f32 1.442695, %v783_v59  ;;  %v855_v53 = vmul.f32 1.442695, %v784_v61 }
 0x293   : > { %v1299_v18 = vpop.eup %1298  ;;  %v695_v42 = vpop.xlane.xlu1 %694 }
 0x294   : > { %v1301_v24 = vpop.eup %1300  ;;  %1308 = vpow2.f32 %v853_v9  ;;  %v785_v4 = vsub.f32 %v1789_v15, %v695_v42  ;;  %v786_v0 = vsub.f32 %v1792_v17, %v695_v42 }
 0x295   : > { %v1303_v7 = vpop.eup %1302  ;;  %1310 = vpow2.f32 %v855_v53  ;;  %v969_v8 = vpack.c.bf16 %v1301_v24, %v1297_v45 }
 0x296   : > { %v857_v12 = vmul.f32 1.442695, %v785_v4  ;;  %v970_v11 = vpack.c.bf16 %v1303_v7, %v1299_v18  ;;  %v859_v55 = vmul.f32 1.442695, %v786_v0 }
 0x297   : > { %v698_v10 = vpop.xlane.xlu1 %697 }
 0x298   : > { %1001 = vmatprep.subr.bf16.mxu1 %v970_v11  ;;  %1058 = vmatprep.subr.bf16.mxu0 %v970_v11  ;;  %v787_v57 = vsub.f32 %v1795_v20, %v698_v10  ;;  %v788_v15 = vsub.f32 %v1798_v21, %v698_v10  ;;  %1312 = vpow2.f32 %v857_v12 }
 0x299   : > { %1002 = vmatpush1.bf16.xpose.msra.mxu1 %v969_v8  ;;  %1059 = vmatpush1.bf16.msra.mxu0 %v969_v8  ;;  %1314 = vpow2.f32 %v859_v55 }
 0x29a   : > { %v861_v17 = vmul.f32 1.442695, %v787_v57  ;;  %v863_v34 = vmul.f32 1.442695, %v788_v15  ;;  %v1305_v59 = vpop.eup %1304 }
 0x29b   : > { %v701_v52 = vpop.xlane.xlu1 %700  ;;  %v1307_v9 = vpop.eup %1306 }
 0x29c   : > { %1316 = vpow2.f32 %v861_v17  ;;  %v789_v61 = vsub.f32 %v1805_v25, %v701_v52  ;;  %v790_v45 = vsub.f32 %v1808_v27, %v701_v52 }
 0x29d   : > { %1318 = vpow2.f32 %v863_v34 }
 0x29e   : > { %v1309_v53 = vpop.eup %1308  ;;  %v865_v18 = vmul.f32 1.442695, %v789_v61  ;;  %v867_v42 = vmul.f32 1.442695, %v790_v45 }
 0x29f   : > { %v1311_v20 = vpop.eup %1310  ;;  %v704_v21 = vpop.xlane.xlu1 %703  ;;  %v971_v2 = vpack.c.bf16 %v1309_v53, %v1305_v59 }
 0x2a0   : > { %v791_v24 = vsub.f32 %v1811_v30, %v704_v21  ;;  %v792_v4 = vsub.f32 %v1814_v31, %v704_v21  ;;  %v972_v0 = vpack.c.bf16 %v1311_v20, %v1307_v9  ;;  %1320 = vpow2.f32 %v865_v18 }
 0x2a1   : > { %1322 = vpow2.f32 %v867_v42 }
 0x2a2   : > { %v869_v7 = vmul.f32 1.442695, %v791_v24  ;;  %v871_v8 = vmul.f32 1.442695, %v792_v4  ;;  %1003 = vmatprep.subr.bf16.mxu1 %v972_v0  ;;  %1060 = vmatprep.subr.bf16.mxu0 %v972_v0  ;;  %v1313_v27 = vpop.eup %1312 }
 0x2a3   : > { %1004 = vmatpush1.bf16.xpose.msra.mxu1 %v971_v2  ;;  %1061 = vmatpush1.bf16.msra.mxu0 %v971_v2  ;;  %v707_v25 = vpop.xlane.xlu1 %706  ;;  %v1315_v55 = vpop.eup %1314 }
 0x2a4   : > { %1324 = vpow2.f32 %v869_v7  ;;  %v793_v12 = vsub.f32 %v1821_v35, %v707_v25  ;;  %v794_v11 = vsub.f32 %v1824_v37, %v707_v25 }
 0x2a5   : > { %1326 = vpow2.f32 %v871_v8 }
 0x2a6   : > { %v1317_v30 = vpop.eup %1316  ;;  %v873_v31 = vmul.f32 1.442695, %v793_v12  ;;  %v875_v57 = vmul.f32 1.442695, %v794_v11 }
 0x2a7   : > { %v1319_v10 = vpop.eup %1318  ;;  %v710_v15 = vpop.xlane.xlu1 %709  ;;  %v973_v17 = vpack.c.bf16 %v1317_v30, %v1313_v27 }
 0x2a8   : > { %v795_v34 = vsub.f32 %v1827_v40, %v710_v15  ;;  %v796_v52 = vsub.f32 %v1830_v41, %v710_v15  ;;  %v974_v59 = vpack.c.bf16 %v1319_v10, %v1315_v55  ;;  %1328 = vpow2.f32 %v873_v31 }
 0x2a9   : > { %1330 = vpow2.f32 %v875_v57 }
 0x2aa   : > { %v877_v61 = vmul.f32 1.442695, %v795_v34  ;;  %v879_v45 = vmul.f32 1.442695, %v796_v52  ;;  %1005 = vmatprep.subr.bf16.mxu1 %v974_v59  ;;  %1062 = vmatprep.subr.bf16.mxu0 %v974_v59  ;;  %v1321_v37 = vpop.eup %1320 }
 0x2ab   : > { %1006 = vmatpush1.bf16.xpose.msra.mxu1 %v973_v17  ;;  %1063 = vmatpush1.bf16.msra.mxu0 %v973_v17  ;;  %v713_v35 = vpop.xlane.xlu0 %712  ;;  %v1323_v18 = vpop.eup %1322 }
 0x2ac   : > { %1332 = vpow2.f32 %v877_v61  ;;  %v797_v9 = vsub.f32 %v1840_v46, %v713_v35  ;;  %v798_v53 = vsub.f32 %v1844_v48, %v713_v35 }
 0x2ad   : > { %1334 = vpow2.f32 %v879_v45  ;;  %v716_v40 = vpop.xlane.xlu1 %715 }
 0x2ae   : > { %v1325_v41 = vpop.eup %1324  ;;  %v881_v20 = vmul.f32 1.442695, %v797_v9  ;;  %v799_v42 = vsub.f32 %v1848_v50, %v716_v40  ;;  %v800_v21 = vsub.f32 %v1851_v54, %v716_v40  ;;  %v883_v4 = vmul.f32 1.442695, %v798_v53 }
 0x2af   : > { %v1327_v2 = vpop.eup %1326  ;;  %v975_v24 = vpack.c.bf16 %v1325_v41, %v1321_v37 }
 0x2b0   : > { %v885_v0 = vmul.f32 1.442695, %v799_v42  ;;  %v887_v7 = vmul.f32 1.442695, %v800_v21  ;;  %v976_v8 = vpack.c.bf16 %v1327_v2, %v1323_v18  ;;  %1336 = vpow2.f32 %v881_v20 }
 0x2b2   : > { %1338 = vpow2.f32 %v885_v0  ;;  %1007 = vmatprep.subr.bf16.mxu1 %v976_v8  ;;  %1064 = vmatprep.subr.bf16.mxu0 %v976_v8  ;;  %v1329_v48 = vpop.eup %1328 }
 0x2b3   : > { %1340 = vpow2.f32 %v887_v7  ;;  %1008 = vmatpush1.bf16.xpose.msra.mxu1 %v975_v24  ;;  %1065 = vmatpush1.bf16.msra.mxu0 %v975_v24  ;;  %v719_v46 = vpop.xlane.xlu0 %718  ;;  %v1331_v25 = vpop.eup %1330 }
 0x2b4   : > { %1342 = vpow2.f32 %v883_v4  ;;  %v801_v50 = vsub.f32 %v1858_v62, %v719_v46  ;;  %v802_v54 = vsub.f32 %v1861_v63, %v719_v46 }
 0x2b5   : > { %v722_v27 = vpop.xlane.xlu1 %721 }
 0x2b6   : > { %v1333_v12 = vpop.eup %1332  ;;  %v889_v11 = vmul.f32 1.442695, %v801_v50  ;;  %v803_v55 = vsub.f32 %v1864_v3, %v722_v27  ;;  %v804_v30 = vsub.f32 %v1867_v6, %v722_v27  ;;  %v891_v57 = vmul.f32 1.442695, %v802_v54 }
 0x2b7   : > { %v1335_v31 = vpop.eup %1334  ;;  %v977_v10 = vpack.c.bf16 %v1333_v12, %v1329_v48 }
 0x2b8   : > { %v893_v15 = vmul.f32 1.442695, %v803_v55  ;;  %v895_v17 = vmul.f32 1.442695, %v804_v30  ;;  %v978_v34 = vpack.c.bf16 %v1335_v31, %v1331_v25  ;;  %1344 = vpow2.f32 %v889_v11 }
 0x2ba   : > { %1346 = vpow2.f32 %v893_v15  ;;  %1009 = vmatprep.subr.bf16.mxu1 %v978_v34  ;;  %1066 = vmatprep.subr.bf16.mxu0 %v978_v34  ;;  %v1337_v62 = vpop.eup %1336 }
 0x2bb   : > { %1348 = vpow2.f32 %v895_v17  ;;  %1010 = vmatpush1.bf16.xpose.msra.mxu1 %v977_v10  ;;  %1067 = vmatpush1.bf16.msra.mxu0 %v977_v10  ;;  %v725_v63 = vpop.xlane.xlu0 %724 }
 0x2bc   : > { %v1339_v52 = vpop.eup %1338  ;;  %1350 = vpow2.f32 %v891_v57  ;;  %v805_v3 = vsub.f32 %v1874_v16, %v725_v63  ;;  %v806_v6 = vsub.f32 %v1877_v19, %v725_v63 }
 0x2bd   : > { %v1341_v59 = vpop.eup %1340  ;;  %v728_v61 = vpop.xlane.xlu1 %727  ;;  %v979_v53 = vpack.c.bf16 %v1339_v52, %v1337_v62 }
 0x2be   : > { %v1343_v45 = vpop.eup %1342  ;;  %v897_v35 = vmul.f32 1.442695, %v805_v3  ;;  %v807_v37 = vsub.f32 %v1880_v23, %v728_v61  ;;  %v808_v9 = vsub.f32 %v1883_v26, %v728_v61  ;;  %v899_v40 = vmul.f32 1.442695, %v806_v6 }
 0x2bf   : > { %v980_v18 = vpack.c.bf16 %v1341_v59, %v1343_v45 }
 0x2c0   : > { %v901_v41 = vmul.f32 1.442695, %v807_v37  ;;  %v903_v20 = vmul.f32 1.442695, %v808_v9  ;;  %1352 = vpow2.f32 %v897_v35 }
 0x2c1   : > { %1011 = vmatprep.subr.bf16.mxu1 %v980_v18  ;;  %1068 = vmatprep.subr.bf16.mxu0 %v980_v18 }
 0x2c2   : > { %1354 = vpow2.f32 %v901_v41  ;;  %1069 = vmatpush1.bf16.msra.mxu0 %v979_v53  ;;  %v1345_v16 = vpop.eup %1344 }
 0x2c3   : > { %1356 = vpow2.f32 %v903_v20  ;;  %1012 = vmatpush1.bf16.xpose.msra.mxu1 %v979_v53  ;;  %v731_v19 = vpop.xlane.xlu0 %730 }
 0x2c4   : > { %v1347_v42 = vpop.eup %1346  ;;  %1358 = vpow2.f32 %v899_v40  ;;  %v809_v23 = vsub.f32 %v1890_v33, %v731_v19  ;;  %v810_v26 = vsub.f32 %v1893_v36, %v731_v19 }
 0x2c5   : > { %v1349_v21 = vpop.eup %1348  ;;  %v734_v2 = vpop.xlane.xlu1 %733  ;;  %v981_v8 = vpack.c.bf16 %v1347_v42, %v1345_v16  ;;  %v2190_v42 = vld [vmem:[#allocation8_spill] sm:$0xff] }
 0x2c6   : > { %v1351_v24 = vpop.eup %1350  ;;  %v905_v4 = vmul.f32 1.442695, %v809_v23  ;;  %v811_v0 = vsub.f32 %v1896_v39, %v734_v2  ;;  %v812_v7 = vsub.f32 %v1899_v43, %v734_v2  ;;  %v907_v48 = vmul.f32 1.442695, %v810_v26 }
 0x2c7   : > { %v982_v46 = vpack.c.bf16 %v1349_v21, %v1351_v24 }
 0x2c8   : > { %v909_v50 = vmul.f32 1.442695, %v811_v0  ;;  %v911_v54 = vmul.f32 1.442695, %v812_v7  ;;  %1360 = vpow2.f32 %v905_v4  ;;  %v2191_v7 = vld [vmem:[#allocation9_spill] sm:$0xff] }
 0x2c9   : > { %1013 = vmatprep.subr.bf16.mxu1 %v982_v46  ;;  %1070 = vmatprep.subr.bf16.mxu0 %v982_v46 }
 0x2ca   : > { %1362 = vpow2.f32 %v909_v50  ;;  %1071 = vmatpush1.bf16.msra.mxu0 %v981_v8  ;;  %v1353_v33 = vpop.eup %1352 }
 0x2cb   : > { %1364 = vpow2.f32 %v911_v54  ;;  %1014 = vmatpush1.bf16.xpose.msra.mxu1 %v981_v8  ;;  %v737_v36 = vpop.xlane.xlu0 %736  ;;  %v2192_v8 = vld [vmem:[#allocation10_spill] sm:$0xff] }
 0x2cc   : > { %v1355_v25 = vpop.eup %1354  ;;  %1366 = vpow2.f32 %v907_v48  ;;  %v813_v39 = vsub.f32 %v1906_v49, %v737_v36  ;;  %v814_v43 = vsub.f32 %v1909_v56, %v737_v36  ;;  %v2193_v36 = vld [vmem:[#allocation11_spill] sm:$0xff] }
 0x2cd   : > { %v1357_v27 = vpop.eup %1356  ;;  %v740_v12 = vpop.xlane.xlu1 %739  ;;  %v983_v10 = vpack.c.bf16 %v1355_v25, %v1353_v33 }
 0x2ce   : > { %v1359_v11 = vpop.eup %1358  ;;  %v913_v55 = vmul.f32 1.442695, %v813_v39  ;;  %v815_v30 = vsub.f32 %v1912_v60, %v740_v12  ;;  %v816_v31 = vsub.f32 %v1915_v1, %v740_v12  ;;  %v915_v15 = vmul.f32 1.442695, %v814_v43  ;;  %v2194_v39 = vld [vmem:[#allocation12_spill] sm:$0xff] }
 0x2cf   : > { %v984_v57 = vpack.c.bf16 %v1357_v27, %v1359_v11 }
 0x2d0   : > { %v917_v17 = vmul.f32 1.442695, %v815_v30  ;;  %v919_v34 = vmul.f32 1.442695, %v816_v31  ;;  %1368 = vpow2.f32 %v913_v55 }
 0x2d1   : > { %1015 = vmatprep.subr.bf16.mxu1 %v984_v57  ;;  %1072 = vmatprep.subr.bf16.mxu0 %v984_v57 }
 0x2d2   : > { %1370 = vpow2.f32 %v917_v17  ;;  %1073 = vmatpush1.bf16.msra.mxu0 %v983_v10  ;;  %v1361_v49 = vpop.eup %1360 }
 0x2d3   : > { %1372 = vpow2.f32 %v919_v34  ;;  %1016 = vmatpush1.bf16.xpose.msra.mxu1 %v983_v10  ;;  %v743_v56 = vpop.xlane.xlu0 %742  ;;  %v2196_v34 = vld [vmem:[#allocation14_spill] sm:$0xff] }
 0x2d4   : > { %v1363_v62 = vpop.eup %1362  ;;  %1374 = vpow2.f32 %v915_v15  ;;  %v817_v60 = vsub.f32 %v1922_v14, %v743_v56  ;;  %v818_v1 = vsub.f32 %v1925_v22, %v743_v56  ;;  %v2195_v15 = vld [vmem:[#allocation13_spill] sm:$0xff]  ;;  %v2079_v56 = vpop.f32.mrb[2].mxu1 }
 0x2d5   : > { %v1365_v63 = vpop.eup %1364  ;;  %v746_v52 = vpop.xlane.xlu1 %745  ;;  %v985_v45 = vpack.c.bf16 %v1363_v62, %v1361_v49 }
 0x2d6   : > { %v1367_v3 = vpop.eup %1366  ;;  %v921_v6 = vmul.f32 1.442695, %v817_v60  ;;  %v819_v59 = vsub.f32 %v1928_v28, %v746_v52  ;;  %v820_v61 = vsub.f32 %v1931_v32, %v746_v52  ;;  %v923_v37 = vmul.f32 1.442695, %v818_v1  ;;  %v2081_v1 = vpop.f32.mrb[3].mxu1 }
 0x2d7   : > { %v986_v35 = vpack.c.bf16 %v1365_v63, %v1367_v3  ;;  %v2197_v3 = vld [vmem:[#allocation15_spill] sm:$0xff] }
 0x2d8   : > { %v925_v9 = vmul.f32 1.442695, %v819_v59  ;;  %v927_v53 = vmul.f32 1.442695, %v820_v61  ;;  %1376 = vpow2.f32 %v921_v6  ;;  %v2198_v59 = vld [vmem:[#allocation16_spill] sm:$0xff] }
 0x2d9   : > { %1017 = vmatprep.subr.bf16.mxu1 %v986_v35  ;;  %1074 = vmatprep.subr.bf16.mxu0 %v986_v35 }
 0x2da   : > { %1378 = vpow2.f32 %v925_v9  ;;  %1075 = vmatpush1.bf16.msra.mxu0 %v985_v45  ;;  %v1369_v14 = vpop.eup %1368 }
 0x2db   : > { %1380 = vpow2.f32 %v927_v53  ;;  %1018 = vmatpush1.bf16.xpose.msra.mxu1 %v985_v45  ;;  %v749_v22 = vpop.xlane.xlu0 %748 }
 0x2dc   : > { %v1371_v18 = vpop.eup %1370  ;;  %1382 = vpow2.f32 %v923_v37  ;;  %v821_v28 = vsub.f32 %v1938_v44, %v749_v22  ;;  %v822_v32 = vsub.f32 %v1941_v47, %v749_v22 }
 0x2dd   : > { %v1373_v40 = vpop.eup %1372  ;;  %v752_v41 = vpop.xlane.xlu1 %751  ;;  %v987_v26 = vpack.c.bf16 %v1371_v18, %v1369_v14 }
 0x2de   : > { %v1375_v20 = vpop.eup %1374  ;;  %v929_v16 = vmul.f32 1.442695, %v821_v28  ;;  %v823_v19 = vsub.f32 %v1944_v58, %v752_v41  ;;  %v824_v23 = vsub.f32 %v2190_v42, %v752_v41  ;;  %v931_v2 = vmul.f32 1.442695, %v822_v32  ;;  %v2199_v32 = vld [vmem:[#allocation17_spill] sm:$0xff] }
 0x2df   : > { %v988_v21 = vpack.c.bf16 %v1373_v40, %v1375_v20 }
 0x2e0   : > { %v933_v24 = vmul.f32 1.442695, %v823_v19  ;;  %v935_v4 = vmul.f32 1.442695, %v824_v23  ;;  %1384 = vpow2.f32 %v929_v16 }
 0x2e1   : > { %1019 = vmatprep.subr.bf16.mxu1 %v988_v21  ;;  %1076 = vmatprep.subr.bf16.mxu0 %v988_v21 }
 0x2e2   : > { %1386 = vpow2.f32 %v933_v24  ;;  %1077 = vmatpush1.bf16.msra.mxu0 %v987_v26  ;;  %v1377_v44 = vpop.eup %1376 }
 0x2e3   : > { %1388 = vpow2.f32 %v935_v4  ;;  %1020 = vmatpush1.bf16.xpose.msra.mxu1 %v987_v26  ;;  %v755_v47 = vpop.xlane.xlu0 %754 }
 0x2e4   : > { %v1379_v0 = vpop.eup %1378  ;;  %1390 = vpow2.f32 %v931_v2  ;;  %v825_v58 = vsub.f32 %v2191_v7, %v755_v47  ;;  %v826_v46 = vsub.f32 %v2192_v8, %v755_v47  ;;  %v2200_v7 = vld [vmem:[#allocation18_spill] sm:$0xff] }
 0x2e5   : > { %v1381_v48 = vpop.eup %1380  ;;  %v758_v50 = vpop.xlane.xlu1 %757  ;;  %v989_v27 = vpack.c.bf16 %v1379_v0, %v1377_v44 }
 0x2e6   : > { %v1383_v54 = vpop.eup %1382  ;;  %v937_v33 = vmul.f32 1.442695, %v825_v58  ;;  %v827_v25 = vsub.f32 %v2193_v36, %v758_v50  ;;  %v828_v43 = vsub.f32 %v2194_v39, %v758_v50  ;;  %v939_v11 = vmul.f32 1.442695, %v826_v46  ;;  %v2202_v36 = vld [vmem:[#allocation20_spill] sm:$0xff] }
 0x2e7   : > { %v990_v12 = vpack.c.bf16 %v1381_v48, %v1383_v54  ;;  %v2201_v54 = vld [vmem:[#allocation19_spill] sm:$0xff] }
 0x2e8   : > { %v941_v55 = vmul.f32 1.442695, %v827_v25  ;;  %v943_v30 = vmul.f32 1.442695, %v828_v43  ;;  %1392 = vpow2.f32 %v937_v33 }
 0x2e9   : > { %1021 = vmatprep.subr.bf16.mxu1 %v990_v12  ;;  %1078 = vmatprep.subr.bf16.mxu0 %v990_v12 }
 0x2ea   : > { %1394 = vpow2.f32 %v941_v55  ;;  %1079 = vmatpush1.bf16.msra.mxu0 %v989_v27  ;;  %v1385_v31 = vpop.eup %1384 }
 0x2eb   : > { %1396 = vpow2.f32 %v943_v30  ;;  %1022 = vmatpush1.bf16.xpose.msra.mxu1 %v989_v27  ;;  %v761_v10 = vpop.xlane.xlu0 %760 }
 0x2ec   : > { %v1387_v57 = vpop.eup %1386  ;;  %1398 = vpow2.f32 %v939_v11  ;;  %v829_v17 = vsub.f32 %v2195_v15, %v761_v10  ;;  %v830_v49 = vsub.f32 %v2196_v34, %v761_v10 }
 0x2ed   : > { %v1389_v62 = vpop.eup %1388  ;;  %v764_v60 = vpop.xlane.xlu1 %763  ;;  %v991_v45 = vpack.c.bf16 %v1387_v57, %v1385_v31 }
 0x2ee   : > { %v1391_v63 = vpop.eup %1390  ;;  %v945_v52 = vmul.f32 1.442695, %v829_v17  ;;  %v831_v6 = vsub.f32 %v2197_v3, %v764_v60  ;;  %v832_v61 = vsub.f32 %v2198_v59, %v764_v60  ;;  %v947_v37 = vmul.f32 1.442695, %v830_v49 }
 0x2ef   : > { %v992_v35 = vpack.c.bf16 %v1389_v62, %v1391_v63 }
 0x2f0   : > { %v949_v9 = vmul.f32 1.442695, %v831_v6  ;;  %v951_v53 = vmul.f32 1.442695, %v832_v61  ;;  %1400 = vpow2.f32 %v945_v52  ;;  %v1044_v52 = vlaneseq }
 0x2f1   : > { %1023 = vmatprep.subr.bf16.mxu1 %v992_v35  ;;  %1080 = vmatprep.subr.bf16.mxu0 %v992_v35 }
 0x2f2   : > { %1402 = vpow2.f32 %v949_v9  ;;  %1081 = vmatpush1.bf16.msra.mxu0 %v991_v45  ;;  %v1393_v14 = vpop.eup %1392  ;;  %v1045_v61 = vshrl.u32 %v1044_v52, 7 }
 0x2f3   : > { %1404 = vpow2.f32 %v951_v53  ;;  %1024 = vmatpush1.bf16.xpose.msra.mxu1 %v991_v45  ;;  %v767_v22 = vpop.xlane.xlu0 %766 }
 0x2f4   : > { %v1395_v18 = vpop.eup %1394  ;;  %1406 = vpow2.f32 %v947_v37  ;;  %v833_v28 = vsub.f32 %v1986_v29, %v767_v22  ;;  %v834_v40 = vsub.f32 %v2199_v32, %v767_v22  ;;  %v1046_v45 = vsub.s32 0, %v1045_v61 }
 0x2f5   : > { %v1397_v41 = vpop.eup %1396  ;;  %v770_v20 = vpop.xlane.xlu1 %769  ;;  %v993_v16 = vpack.c.bf16 %v1395_v18, %v1393_v14 }
 0x2f6   : > { %v1399_v19 = vpop.eup %1398  ;;  %v953_v42 = vmul.f32 1.442695, %v833_v28  ;;  %v955_v23 = vmul.f32 1.442695, %v834_v40  ;;  %v835_v26 = vsub.f32 %v1992_v5, %v770_v20  ;;  %v836_v21 = vsub.f32 %v1995_v38, %v770_v20 }
 0x2f7   : > { %v994_v2 = vpack.c.bf16 %v1397_v41, %v1399_v19 }
 0x2f8   : > { %1408 = vpow2.f32 %v953_v42  ;;  %v957_v24 = vmul.f32 1.442695, %v835_v26  ;;  %v959_v4 = vmul.f32 1.442695, %v836_v21  ;;  %v1429_v21 = vld [vmem:[%s1670_s11 + $0x8] sm:$0xff] }
 0x2f9   : > { %1410 = vpow2.f32 %v955_v23  ;;  %1025 = vmatprep.subr.bf16.mxu1 %v994_v2  ;;  %1082 = vmatprep.subr.bf16.mxu0 %v994_v2  ;;  %v1428_v23 = vld [vmem:[%s1670_s11] sm:$0xff] }
 0x2fa   : > { %1412 = vpow2.f32 %v957_v24  ;;  %1083 = vmatpush1.bf16.msra.mxu0 %v993_v16  ;;  %v1401_v29 = vpop.eup %1400 }
 0x2fb   : > { %1414 = vpow2.f32 %v959_v4  ;;  %1026 = vmatpush1.bf16.xpose.msra.mxu1 %v993_v16  ;;  %v773_v44 = vpop.xlane.xlu0 %772  ;;  %v1430_v4 = vld [vmem:[%s1670_s11 + $0x10] sm:$0xff] }
 0x2fc   : > { %v1403_v47 = vpop.eup %1402  ;;  %v837_v0 = vsub.f32 %v2002_v51, %v773_v44  ;;  %v838_v5 = vsub.f32 %v2200_v7, %v773_v44 }
 0x2fd   : > { %v1405_v58 = vpop.eup %1404  ;;  %v776_v38 = vpop.xlane.xlu1 %775  ;;  %v995_v8 = vpack.c.bf16 %v1403_v47, %v1401_v29  ;;  %v1431_v47 = vld [vmem:[%s1670_s11 + $0x18] sm:$0xff] }
 0x2fe   : > { %v1407_v46 = vpop.eup %1406  ;;  %v961_v48 = vmul.f32 1.442695, %v837_v0  ;;  %v963_v50 = vmul.f32 1.442695, %v838_v5  ;;  %v839_v33 = vsub.f32 %v2201_v54, %v776_v38  ;;  %v840_v25 = vsub.f32 %v2202_v36, %v776_v38 }
 0x2ff   : > { %v996_v39 = vpack.c.bf16 %v1405_v58, %v1407_v46 }
 0x300   : > { %1416 = vpow2.f32 %v961_v48  ;;  %v965_v43 = vmul.f32 1.442695, %v839_v33  ;;  %v967_v27 = vmul.f32 1.442695, %v840_v25 }
 0x301   : > { %1418 = vpow2.f32 %v963_v50  ;;  %1027 = vmatprep.subr.bf16.mxu1 %v996_v39  ;;  %1084 = vmatprep.subr.bf16.mxu0 %v996_v39  ;;  %v293_v37 = vpop.permute.xlu1 %292 }
 0x302   : > { %v1409_v51 = vpop.eup %1408  ;;  %1420 = vpow2.f32 %v965_v43  ;;  %1085 = vmatpush1.bf16.msra.mxu0 %v995_v8 }
 0x303   : > { %v1411_v12 = vpop.eup %1410  ;;  %1422 = vpow2.f32 %v967_v27  ;;  %1028 = vmatpush1.bf16.xpose.msra.mxu1 %v995_v8  ;;  %v288_v35 = vpop.permute.xlu0 %287 }
 0x304   : > { %v1413_v11 = vpop.eup %1412  ;;  %v368_v14 = vadd.f32 %v2079_v56, %v288_v35  ;;  %v370_v18 = vadd.f32 %v2081_v1, %v288_v35 }
 0x305   : > { %v1415_v55 = vpop.eup %1414  ;;  %v997_v30 = vpack.c.bf16 %v1413_v11, %v1409_v51 }
 0x306   : > { %v998_v31 = vpack.c.bf16 %v1415_v55, %v1411_v12 }
 0x308   : > { %1029 = vmatprep.subr.bf16.mxu1 %v998_v31  ;;  %1086 = vmatprep.subr.bf16.mxu0 %v998_v31 }
 0x309   : > { %1087 = vmatpush1.bf16.msra.mxu0 %v997_v30 }
 0x30a   : > { %v1417_v10 = vpop.eup %1416 }
 0x30b   : > { %v1419_v57 = vpop.eup %1418  ;;  %1030 = vmatpush1.bf16.xpose.msra.mxu1 %v997_v30 }
 0x30c   : > { %v1421_v15 = vpop.eup %1420 }
 0x30d   : > { %v1423_v17 = vpop.eup %1422  ;;  %v999_v34 = vpack.c.bf16 %v1421_v15, %v1417_v10 }
 0x30e   : > { %v1000_v49 = vpack.c.bf16 %v1423_v17, %v1419_v57 }
 0x310   : > { %1031 = vmatprep.subr.bf16.mxu1 %v1000_v49  ;;  %1088 = vmatprep.subr.bf16.mxu0 %v1000_v49 }
 0x311   : > { %1089 = vmatpush1.bf16.msra.mxu0 %v999_v34 }
 0x313   : > { %1032 = vmatpush1.bf16.xpose.msra.mxu1 %v999_v34 }
 0x31a   : > { %1034 = vmatmul.mubr.bf16.vlgmr.msra.gmra.mrb[8].mxu1 %v1536_v13 }
 0x360   : > { %v373_v62 = vpop.f32.mrb[4].mxu1 }
 0x361   : > { %v375_v60 = vpop.f32.mrb[5].mxu1  ;;  %v374_v22 = vadd.f32 %v373_v62, %v293_v37 }
 0x362   : > { %v376_v28 = vadd.f32 %v375_v60, %v293_v37 }
 0x3ed   : > { %v1035_v63 = vpop.f32.mrb[8].mxu1 }
 0x3ee   : > { %1424 = vrcp.f32 %v1035_v63  ;;  %v1037_v3 = vpop.f32.mrb[9].mxu1 }
 0x3ef   : > { %1426 = vrcp.f32 %v1037_v3  ;;  %v1039_v6 = vpop.f32.mrb[10].mxu1 }
 0x3f0   : > { %v1040_v59 = vpop.f32.mrb[11].mxu1 }
 0x3f8   : > { %v1425_v9 = vpop.eup %1424 }
 0x3f9   : > { %v1427_v53 = vpop.eup %1426  ;;  %v1047_v13 = vrot.slane %v1425_v9, %v1046_v45 }
 0x3fa   : > { %v1051_v32 = vrot.slane %v1427_v53, %v1046_v45 }
 0x3fb   : > { %v1052_v40 = vmul.f32 %v1047_v13, %v368_v14  ;;  %v1054_v41 = vmul.f32 %v1047_v13, %v374_v22 }
 0x3fc   : > { %v1053_v20 = vmul.f32 %v1051_v32, %v370_v18  ;;  %v1055_v16 = vmul.f32 %v1051_v32, %v376_v28 }
 0x3fd   : > { %v1056_v19 = vpack.c.bf16 %v1054_v41, %v1052_v40 }
 0x3fe   : > { %v1057_v42 = vpack.c.bf16 %v1055_v16, %v1053_v20 }
 0x400   : > { %1090 = vmatprep.mubr.bf16.mxu0 %v1057_v42 }
 0x401   : > { %1091 = vmatmul.mubr.bf16.vlgmr.msra.gmra.mrb[68].mxu0 %v1056_v19 }
 0x4d4   : > { %v1092_v56 = vpop.f32.mrb[68].mxu0 }
 0x4d5   : > { %v1093_v1 = vadd.f32 %v1428_v23, %v1092_v56  ;;  %v1094_v26 = vpop.f32.mrb[69].mxu0 }
 0x4d6   : > { %v1095_v2 = vadd.f32 %v1429_v21, %v1094_v26  ;;  %v1096_v24 = vpop.f32.mrb[70].mxu0 }
 0x4d7   : > { %1101 = vst [vmem:[%s188_s29] sm:$0xff] %v1093_v1  ;;  %v1097_v29 = vadd.f32 %v1430_v4, %v1096_v24  ;;  %v1098_v44 = vpop.f32.mrb[71].mxu0 }
 0x4d8   : > { %1102 = vst [vmem:[%s188_s29 + $0x8] sm:$0xff] %v1095_v2  ;;  %v1099_v0 = vadd.f32 %v1431_v47, %v1098_v44 }
 0x4d9   : > { %1103 = vst [vmem:[%s188_s29 + $0x10] sm:$0xff] %v1097_v29 }
 0x4da   : > { %1104 = vst [vmem:[%s188_s29 + $0x18] sm:$0xff] %v1099_v0 }
 0x4db   : > { %1475 = shalt.err (!%p1472_p2)
}
 0x4dc   : > { %s1476_s11 = scalar_lea.hbm %s2107_s16, 512  ;;  %s1480_s22 = scalar_lea.hbm %s2155_s3, 1024 }
 0x4dd   : > { %p1477_p4 = scmp.ne.s32.totalorder %s2107_s16, %s1476_s11  ;;  %p1481_p9 = scmp.lt.u32.totalorder %s2107_s16, %s2155_s3 }
 0x4de   : > { %p1482_p1 = scmp.lt.u32.totalorder %s1480_s22, %s1476_s11  ;;  %p1484_p6 = scmp.lt.u32.totalorder %s1476_s11, %s2107_s16 }
 0x4df   : > { %p1478_p5 = pnand %p1477_p4, %p2203_p11 }
 0x4e0   : > { %p1483_p3 = por %p1482_p1, %p1481_p9 }
 0x4e1   : > { %p1479_p7 = pneg %p1478_p5 }
 0x4e2   : > { %p1485_p12 = por %p1484_p6, %p1483_p3 }
 0x4e4   : > { %p1486_p13 = pnand %p1485_p12, %p1479_p7 }
 0x4e6   : > { %1489 = shalt.err (!%p1486_p13)
}
 0x4e7   : > { %s1538_s28 = smov 256   ;;  %s1539_s29 = smov 16  }
 0x4e8   : > { %1240 = dma.vmem_to_hbm [thread:$0]  (%p2203_p11), %s2100_s30, 512, %s2107_s16, %s1106_s4, %s1538_s28, %s1538_s28, %s1539_s29  }
 0x4e9 PF: > { %s1134_s10 = sand.u32 1, %s1516_s12   ;;  %p2204_p8 = scmp.ne.s32.totalorder %s2174_s25, 0 }
 0x4ea   : > { %p2205_p10 = scmp.ge.s32.totalorder %s1528_s15, 2  ;;  %s1135_s9 = scalar_lea.sflag [#allocation4], %s1134_s10 }
 0x4ec   : > { %p1247_p0 = pnand %p2205_p10, %p2204_p8 }
 0x4ee   : > { %1511 = dma.done.wait (!%p1247_p0), %s1135_s9, 512  }
 0x4ef   : > { %1513 = vsyncadd (!%p1247_p0), %s1135_s9, 4294966784  ;;  %p16_p2 = scmp.ge.s32.totalorder %s1585_s18, 4   ;;  %s2206_s12 = smov %s1520_s13 }
 0x4f0   : > { %s2207_s13 = smov %s1524_s14  ;;  %s2208_s14 = smov %s1597_s21 }
 0x4f1   : > { %s2209_s15 = smov %s1585_s18  ;;  %18 = sbr.rel (!%p16_p2) target bundleno = 5 (0x5), region = 77 }
 0x4f8   :  { %1140 = vsyncpa [#allocation3], 1 }
 0x4f9   :  { %1142 = vsyncpa [#allocation3 + $0x1], 1 }
 0x4fa   :  { %1143 = vsyncpa [#allocation4], 1 }
 0x4fb   :  { %1145 = vsyncpa [#allocation4 + $0x1], 1 }

</bundles_post_ra>
